<compile_context>
chip_gen: v7x
topology: tpu7x:2x2x1
jax: 0.10.0
libtpu: 0.0.40
codegen_flags: <defaults>
</compile_context>

<pallas_src>
import jax
import jax.numpy as jnp
from jax import lax
from jax.experimental import pallas as pl
from jax.experimental.pallas import tpu as pltpu

_SELU_ALPHA = 1.6732632423543772848170429916717
_SELU_SCALE = 1.0507009873554804934193349852946
_BN_EPS = 1e-5
_NORM_EPS = 1e-12


# ----------------------------- in-kernel helpers -----------------------------

def _sigmoid(x):
    return 1.0 / (1.0 + jnp.exp(-x))


def _selu(x):
    return _SELU_SCALE * jnp.where(x > 0, x, _SELU_ALPHA * (jnp.exp(x) - 1.0))


def _l2_normalize(x):
    # F.normalize(x, p=2, dim=-1, eps=1e-12): x / max(||x||, eps)
    ss = jnp.sum(x * x, axis=-1, keepdims=True)
    return x * lax.rsqrt(jnp.maximum(ss, _NORM_EPS * _NORM_EPS))


def _entmax_bisect_lastdim(x, alpha, n_iter=50):
    """General entmax_bisect (only reached when the last dim size > 1).

    x:     (N, K) logits
    alpha: (N, 1) per-row alpha, alpha > 1
    """
    k = x.shape[-1]
    # clamp alpha-1 away from 0: sigmoid(logits)+1 can underflow to exactly 1
    # in f32, which would make 1/(alpha-1) = inf and produce NaNs.
    am1 = jnp.maximum(alpha - 1.0, 1e-6)
    inv_am1 = 1.0 / am1
    xs = x * am1

    def _p(tau):
        base = jnp.maximum(xs - tau, 0.0)
        # base ** (1/(alpha-1)); log(0) -> -inf -> exp -> 0, matching clamp**pow
        return jnp.exp(jnp.log(base) * inv_am1)

    max_val = jnp.max(xs, axis=-1, keepdims=True)
    tau_lo = max_val - 1.0                                   # _gp(1, alpha) == 1
    tau_hi = max_val - jnp.exp(jnp.log(1.0 / k) * inv_am1)   # _gp(1/k, alpha)
    f_lo = jnp.sum(_p(tau_lo), axis=-1, keepdims=True) - 1.0
    dm0 = tau_hi - tau_lo
    p0 = _p(tau_hi)

    def body(_, carry):
        tau_lo_c, dm_c, _p_prev = carry
        dm_c = dm_c * 0.5
        tau_m = tau_lo_c + dm_c
        p_m = _p(tau_m)
        f_m = jnp.sum(p_m, axis=-1, keepdims=True) - 1.0
        # same sign test as the reference entmax implementation
        tau_lo_c = jnp.where(f_m * f_lo >= 0.0, tau_m, tau_lo_c)
        return (tau_lo_c, dm_c, p_m)

    _, _, p_m = lax.fori_loop(0, n_iter, body, (tau_lo, dm0, p0))
    return p_m / jnp.sum(p_m, axis=-1, keepdims=True)


# ----------------------------- fused kernel -----------------------------

def _fused_kernel(e_ui_ref, e_r_ref, center_ref, seg_ref, segT_ref,
                  gw1_ref, gw2_ref, gw3_ref, gb_ref,
                  w1a_ref, w1b_ref, b1_ref,
                  w2_ref, b2_ref, w3_ref, b3_ref,
                  lw_ref, lb_ref,
                  win_ref, bin_ref, wout_ref, bout_ref,
                  g1a_ref, g1b_ref, g1c_ref, g1bias_ref,
                  out_ref):
    f32 = jnp.float32
    num_heads = w1a_ref.shape[0]
    b, d = center_ref.shape

    e_ui = e_ui_ref[...]          # (B*N, D) flattened neighbor embeddings
    e_r = e_r_ref[...]            # (B*N, D) rating embeddings
    center = center_ref[...]      # (B, D)   center-node embeddings
    seg = seg_ref[...]            # (B, B*N) one-hot segment-sum matrix
    segT = segT_ref[...]          # (B*N, B) one-hot broadcast matrix

    # per-neighbor gate: alpha = sigmoid(cat(e_ui, e_r, e_ui*e_r) @ Wg + bg)
    pre = (jnp.dot(e_ui, gw1_ref[...], preferred_element_type=f32)
           + jnp.dot(e_r, gw2_ref[...], preferred_element_type=f32)
           + jnp.dot(e_ui * e_r, gw3_ref[...], preferred_element_type=f32)
           + gb_ref[...])
    a = _sigmoid(pre)
    o_hist = a * e_ui + (1.0 - a) * e_r                     # (B*N, D)

    # Normalize once (hoisted out of the head loop: re-normalizing an
    # L2-normalized row is a no-op).
    o_n = _l2_normalize(o_hist)                             # (B*N, D)

    ui_rep = center                                         # (B, D)
    acc = jnp.zeros((b, d), f32)
    for h in range(num_heads):                              # static unroll
        ui_n = _l2_normalize(ui_rep)                        # (B, D)
        # u_rep.repeat(num_neighs, 1) per node, as one MXU matmul
        ui_full = jnp.dot(segT, ui_n, preferred_element_type=f32)   # (B*N, D)

        # Attention head h (kept for structural fidelity; its output only
        # feeds entmax whose result is exactly 1 here, so Mosaic DCEs it).
        ent_alpha = _sigmoid(jnp.dot(o_n, lw_ref[h], preferred_element_type=f32)
                             + lb_ref[h]) + 1.0             # (B*N, 1)
        x1 = _selu(jnp.dot(o_n, w1a_ref[h], preferred_element_type=f32)
                   + jnp.dot(ui_full, w1b_ref[h], preferred_element_type=f32)
                   + b1_ref[h])                             # (B*N, D)
        x2 = _selu(jnp.dot(x1, w2_ref[h], preferred_element_type=f32)
                   + b2_ref[h])                             # (B*N, D//4)
        logits = (jnp.dot(x2, w3_ref[h], preferred_element_type=f32)
                  + b3_ref[h])                              # (B*N, 1)

        if logits.shape[-1] == 1:
            # entmax over a size-1 last dim is exactly 1 after ensure_sum_one;
            # skip the 50-iteration bisection entirely (static specialization).
            att = jnp.ones_like(logits)
        else:
            att = _entmax_bisect_lastdim(logits, ent_alpha)

        # ui_rep[b] = sum_n att[b,n] * o_n[b,n]  (segment sum as one MXU matmul)
        ui_rep = jnp.dot(seg, att * o_n, preferred_element_type=f32)  # (B, D)
        acc = acc + ui_rep

    neigh = acc * (1.0 / num_heads)                         # (B, D)

    # GAT_MLP with BatchNorm folded into the linears (eval mode; dropout = id)
    x = jnp.dot(neigh, win_ref[...], preferred_element_type=f32) + bin_ref[...]
    x = _selu(x)
    x = jnp.dot(x, wout_ref[...], preferred_element_type=f32) + bout_ref[...]

    # final gate: beta = sigmoid(cat(self, neigh_mlp, self*neigh_mlp) @ Wg1 + bg1)
    pre1 = (jnp.dot(center, g1a_ref[...], preferred_element_type=f32)
            + jnp.dot(x, g1b_ref[...], preferred_element_type=f32)
            + jnp.dot(center * x, g1c_ref[...], preferred_element_type=f32)
            + g1bias_ref[...])
    beta = _sigmoid(pre1)
    out_ref[...] = beta * center + (1.0 - beta) * x


# ----------------------------- wrapper -----------------------------

def ui_aggregator_forward(nodes, history_ui, history_r, params, user=True):
    # glue: embedding gathers in plain JAX
    if user:
        e_ui = params["i2e"][history_ui]        # (B, N, D)
        center = params["u2e"][nodes]           # (B, D)
    else:
        e_ui = params["u2e"][history_ui]
        center = params["i2e"][nodes]
    e_r = params["r2e"][history_r]              # (B, N, D)

    B, N, D = e_ui.shape
    BN = B * N
    H = params["att_w1a"].shape[0]
    D4 = params["att_w2"].shape[-1]

    # flatten neighbors in the wrapper (layout plumbing, free)
    e_ui_f = e_ui.reshape(BN, D)
    e_r_f = e_r.reshape(BN, D)

    # one-hot segment matrices: seg[b, b*N+n] = 1
    seg = (jnp.arange(B, dtype=jnp.int32)[:, None]
           == (jnp.arange(BN, dtype=jnp.int32)[None, :] // N)).astype(jnp.float32)
    segT = seg.T

    # fold BatchNorm (eval mode) into the adjacent Linear layers on the host
    scale0 = params["bn_g"] / jnp.sqrt(params["bn_rv"] + _BN_EPS)       # (1, D)
    shift0 = params["bn_b"] - params["bn_rm"] * scale0
    win_f = scale0.reshape(D, 1) * params["mlp_win"]
    bin_f = shift0 @ params["mlp_win"] + params["mlp_bin"]
    scale1 = params["bn1_g"] / jnp.sqrt(params["bn1_rv"] + _BN_EPS)
    shift1 = params["bn1_b"] - params["bn1_rm"] * scale1
    wout_f = scale1.reshape(D, 1) * params["mlp_wout"]
    bout_f = shift1 @ params["mlp_wout"] + params["mlp_bout"]

    operands = (
        e_ui_f, e_r_f, center, seg, segT,
        params["gate_w1"], params["gate_w2"], params["gate_w3"], params["gate_b"],
        params["att_w1a"], params["att_w1b"], params["att_b1"],
        params["att_w2"], params["att_b2"], params["att_w3"], params["att_b3"],
        params["att_lw"], params["att_lb"],
        win_f, bin_f, wout_f, bout_f,
        params["gate1_w1"], params["gate1_w2"], params["gate1_w3"], params["gate1_b"],
    )

    # advisory cost estimate (rough)
    flops = (
        3 * 2 * BN * D * D                                  # per-neighbor gate
        + H * (2 * BN * D * D + 2 * BN * D * D               # att1 (node + u_rep)
               + 2 * BN * D * D4 + 2 * BN * D4               # att2, att3
               + 2 * BN * D                                   # linear1 (ent alpha)
               + 2 * 2 * B * BN * D)                          # seg broadcast + reduce
        + 2 * 2 * B * D * D                                   # GAT_MLP
        + 3 * 2 * B * D * D                                   # final gate
    )
    transcendentals = BN * D + H * (BN * D + BN * D4 + BN) + 3 * B * D
    bytes_accessed = sum(int(x.size) * 4 for x in operands) + B * D * 4

    out = pl.pallas_call(
        _fused_kernel,
        out_shape=jax.ShapeDtypeStruct((B, D), jnp.float32),
        in_specs=[pl.BlockSpec(memory_space=pltpu.MemorySpace.VMEM)
                  for _ in operands],
        out_specs=pl.BlockSpec(memory_space=pltpu.MemorySpace.VMEM),
        cost_estimate=pl.CostEstimate(flops=int(flops),
                                      transcendentals=int(transcendentals),
                                      bytes_accessed=int(bytes_accessed)),
    )(*operands)
    return out


# ----------------------------- deterministic parameter init -----------------------------

def init_params(key, *, num_users, num_items, num_ratings, embed_dim, ui_hidden_space):
    D = embed_dim
    D4 = D // 4
    H = ui_hidden_space
    keys = iter(jax.random.split(key, 40))

    def nrm(shape, scale=0.1):
        return scale * jax.random.normal(next(keys), shape, jnp.float32)

    p = {}
    p["u2e"] = nrm((num_users, D), 1.0)
    p["i2e"] = nrm((num_items, D), 1.0)
    p["r2e"] = nrm((num_ratings, D), 1.0)

    gw = nrm((3 * D, D))                                         # gate_linear (3D -> D)
    p["gate_w1"], p["gate_w2"], p["gate_w3"] = gw[:D], gw[D:2 * D], gw[2 * D:]
    p["gate_b"] = nrm((1, D))

    w1 = nrm((H, 2 * D, D))                                      # att1 per head (2D -> D)
    p["att_w1a"], p["att_w1b"] = w1[:, :D, :], w1[:, D:, :]
    p["att_b1"] = nrm((H, 1, D))
    p["att_w2"] = nrm((H, D, D4))                                # att2 (D -> D/4)
    p["att_b2"] = nrm((H, 1, D4))
    p["att_w3"] = nrm((H, D4, 1))                                # att3 (D/4 -> 1)
    p["att_b3"] = nrm((H, 1, 1))
    p["att_lw"] = nrm((H, D, 1))                                 # linear1 (D -> 1)
    p["att_lb"] = nrm((H, 1, 1))

    # GAT_MLP: BatchNorm buffers at PyTorch defaults (eval mode)
    p["bn_rm"] = jnp.zeros((1, D), jnp.float32)
    p["bn_rv"] = jnp.ones((1, D), jnp.float32)
    p["bn_g"] = jnp.ones((1, D), jnp.float32)
    p["bn_b"] = jnp.zeros((1, D), jnp.float32)
    p["mlp_win"] = nrm((D, D))
    p["mlp_bin"] = nrm((1, D))
    p["bn1_rm"] = jnp.zeros((1, D), jnp.float32)
    p["bn1_rv"] = jnp.ones((1, D), jnp.float32)
    p["bn1_g"] = jnp.ones((1, D), jnp.float32)
    p["bn1_b"] = jnp.zeros((1, D), jnp.float32)
    p["mlp_wout"] = nrm((D, D))
    p["mlp_bout"] = nrm((1, D))

    g1 = nrm((3 * D, D))                                         # gate_linear1 (3D -> D)
    p["gate1_w1"], p["gate1_w2"], p["gate1_w3"] = g1[:D], g1[D:2 * D], g1[2 * D:]
    p["gate1_b"] = nrm((1, D))
    return p


# ----------------------------- main -----------------------------

if __name__ == "__main__":
    B = 4            # number of query nodes
    N = 8            # fixed history length per node
    D = 32           # embed_dim
    H = 2            # args.ui_hidden_space
    NUM_USERS, NUM_ITEMS, NUM_RATINGS = 10, 12, 5

    key = jax.random.PRNGKey(0)
    k_params, k_hui, k_hr = jax.random.split(key, 3)

    params = init_params(k_params, num_users=NUM_USERS, num_items=NUM_ITEMS,
                         num_ratings=NUM_RATINGS, embed_dim=D, ui_hidden_space=H)

    nodes = jnp.arange(B, dtype=jnp.int32)
    history_ui = jax.random.randint(k_hui, (B, N), 0, NUM_ITEMS, dtype=jnp.int32)
    history_r = jax.random.randint(k_hr, (B, N), 0, NUM_RATINGS, dtype=jnp.int32)

    fwd = jax.jit(ui_aggregator_forward, static_argnames=("user",))
    combined_feats = fwd(nodes, history_ui, history_r, params, user=True)
    combined_feats = jax.block_until_ready(combined_feats)

    assert combined_feats.shape == (B, D)
    assert combined_feats.dtype == jnp.float32
    assert bool(jnp.all(jnp.isfinite(combined_feats)))
    print("KERNEL_OK")
</pallas_src>

<mosaic_0001>
module attributes {stable_mosaic.version = 11 : i64} {
  func.func @_fused_kernel(%arg0: memref<32x32xf32, #tpu.memory_space<vmem>>, %arg1: memref<32x32xf32, #tpu.memory_space<vmem>>, %arg2: memref<4x32xf32, #tpu.memory_space<vmem>>, %arg3: memref<4x32xf32, #tpu.memory_space<vmem>>, %arg4: memref<32x4xf32, #tpu.memory_space<vmem>>, %arg5: memref<32x32xf32, #tpu.memory_space<vmem>>, %arg6: memref<32x32xf32, #tpu.memory_space<vmem>>, %arg7: memref<32x32xf32, #tpu.memory_space<vmem>>, %arg8: memref<1x32xf32, #tpu.memory_space<vmem>>, %arg9: memref<2x32x32xf32, #tpu.memory_space<vmem>>, %arg10: memref<2x32x32xf32, #tpu.memory_space<vmem>>, %arg11: memref<2x1x32xf32, #tpu.memory_space<vmem>>, %arg12: memref<2x32x8xf32, #tpu.memory_space<vmem>>, %arg13: memref<2x1x8xf32, #tpu.memory_space<vmem>>, %arg14: memref<2x8x1xf32, #tpu.memory_space<vmem>>, %arg15: memref<2x1x1xf32, #tpu.memory_space<vmem>>, %arg16: memref<2x32x1xf32, #tpu.memory_space<vmem>>, %arg17: memref<2x1x1xf32, #tpu.memory_space<vmem>>, %arg18: memref<32x32xf32, #tpu.memory_space<vmem>>, %arg19: memref<1x32xf32, #tpu.memory_space<vmem>>, %arg20: memref<32x32xf32, #tpu.memory_space<vmem>>, %arg21: memref<1x32xf32, #tpu.memory_space<vmem>>, %arg22: memref<32x32xf32, #tpu.memory_space<vmem>>, %arg23: memref<32x32xf32, #tpu.memory_space<vmem>>, %arg24: memref<32x32xf32, #tpu.memory_space<vmem>>, %arg25: memref<1x32xf32, #tpu.memory_space<vmem>>, %arg26: memref<4x32xf32, #tpu.memory_space<vmem>>) attributes {dimension_semantics = [], scalar_prefetch = 0 : i64, scratch_operands = 0 : i64, tpu.core_type = #tpu.core_type<tc>} {
    %c0 = arith.constant 0 : index
    %c0_0 = arith.constant 0 : index
    %0 = vector.load %arg0[%c0, %c0_0] : memref<32x32xf32, #tpu.memory_space<vmem>>, vector<32x32xf32>
    %c0_1 = arith.constant 0 : index
    %c0_2 = arith.constant 0 : index
    %1 = vector.load %arg1[%c0_1, %c0_2] : memref<32x32xf32, #tpu.memory_space<vmem>>, vector<32x32xf32>
    %c0_3 = arith.constant 0 : index
    %c0_4 = arith.constant 0 : index
    %2 = vector.load %arg2[%c0_3, %c0_4] : memref<4x32xf32, #tpu.memory_space<vmem>>, vector<4x32xf32>
    %c0_5 = arith.constant 0 : index
    %c0_6 = arith.constant 0 : index
    %3 = vector.load %arg3[%c0_5, %c0_6] : memref<4x32xf32, #tpu.memory_space<vmem>>, vector<4x32xf32>
    %c0_7 = arith.constant 0 : index
    %c0_8 = arith.constant 0 : index
    %4 = vector.load %arg5[%c0_7, %c0_8] : memref<32x32xf32, #tpu.memory_space<vmem>>, vector<32x32xf32>
    %cst = arith.constant dense<0.000000e+00> : vector<32x32xf32>
    %5 = tpu.matmul %0, %4, %cst {dimension_numbers = #tpu.dot_dimension_numbers<[1], [0], [0], [1], [0, 0, 1, 1], [], []>} : vector<32x32xf32>, vector<32x32xf32>, vector<32x32xf32> -> vector<32x32xf32>
    %c0_9 = arith.constant 0 : index
    %c0_10 = arith.constant 0 : index
    %6 = vector.load %arg6[%c0_9, %c0_10] : memref<32x32xf32, #tpu.memory_space<vmem>>, vector<32x32xf32>
    %cst_11 = arith.constant dense<0.000000e+00> : vector<32x32xf32>
    %7 = tpu.matmul %1, %6, %cst_11 {dimension_numbers = #tpu.dot_dimension_numbers<[1], [0], [0], [1], [0, 0, 1, 1], [], []>} : vector<32x32xf32>, vector<32x32xf32>, vector<32x32xf32> -> vector<32x32xf32>
    %8 = arith.addf %5, %7 : vector<32x32xf32>
    %9 = arith.mulf %0, %1 : vector<32x32xf32>
    %c0_12 = arith.constant 0 : index
    %c0_13 = arith.constant 0 : index
    %10 = vector.load %arg7[%c0_12, %c0_13] : memref<32x32xf32, #tpu.memory_space<vmem>>, vector<32x32xf32>
    %cst_14 = arith.constant dense<0.000000e+00> : vector<32x32xf32>
    %11 = tpu.matmul %9, %10, %cst_14 {dimension_numbers = #tpu.dot_dimension_numbers<[1], [0], [0], [1], [0, 0, 1, 1], [], []>} : vector<32x32xf32>, vector<32x32xf32>, vector<32x32xf32> -> vector<32x32xf32>
    %12 = arith.addf %8, %11 : vector<32x32xf32>
    %c0_15 = arith.constant 0 : index
    %c0_16 = arith.constant 0 : index
    %13 = vector.load %arg8[%c0_15, %c0_16] : memref<1x32xf32, #tpu.memory_space<vmem>>, vector<1x32xf32>
    %14 = vector.broadcast %13 : vector<1x32xf32> to vector<32x32xf32>
    %15 = arith.addf %12, %14 : vector<32x32xf32>
    %cst_17 = arith.constant 0.000000e+00 : f32
    %16 = vector.broadcast %cst_17 : f32 to vector<32x32xf32>
    %17 = arith.subf %16, %15 : vector<32x32xf32>
    %18 = math.exp %17 : vector<32x32xf32>
    %cst_18 = arith.constant 1.000000e+00 : f32
    %19 = vector.broadcast %cst_18 : f32 to vector<32x32xf32>
    %20 = arith.addf %19, %18 : vector<32x32xf32>
    %cst_19 = arith.constant 1.000000e+00 : f32
    %21 = vector.broadcast %cst_19 : f32 to vector<32x32xf32>
    %22 = arith.divf %21, %20 : vector<32x32xf32>
    %23 = arith.mulf %22, %0 : vector<32x32xf32>
    %cst_20 = arith.constant 1.000000e+00 : f32
    %24 = vector.broadcast %cst_20 : f32 to vector<32x32xf32>
    %25 = arith.subf %24, %22 : vector<32x32xf32>
    %26 = arith.mulf %25, %1 : vector<32x32xf32>
    %27 = arith.addf %23, %26 : vector<32x32xf32>
    %28 = arith.mulf %27, %27 : vector<32x32xf32>
    %cst_21 = arith.constant dense<0.000000e+00> : vector<32xf32>
    %29 = vector.multi_reduction <add>, %28, %cst_21 [1] : vector<32x32xf32> to vector<32xf32>
    %30 = vector.shape_cast %29 : vector<32xf32> to vector<32x1xf32>
    %cst_22 = arith.constant 1.000000e-24 : f32
    %31 = vector.broadcast %cst_22 : f32 to vector<32x1xf32>
    %32 = arith.maximumf %30, %31 : vector<32x1xf32>
    %33 = math.rsqrt %32 : vector<32x1xf32>
    %34 = vector.broadcast %33 : vector<32x1xf32> to vector<32x32xf32>
    %35 = arith.mulf %27, %34 : vector<32x32xf32>
    %cst_23 = arith.constant 0.000000e+00 : f32
    %36 = vector.broadcast %cst_23 : f32 to vector<4x32xf32>
    %cst_24 = arith.constant 1.000000e+00 : f32
    %37 = vector.broadcast %cst_24 : f32 to vector<32x1xf32>
    %38 = vector.broadcast %37 : vector<32x1xf32> to vector<32x32xf32>
    %39 = arith.mulf %38, %35 : vector<32x32xf32>
    %cst_25 = arith.constant dense<0.000000e+00> : vector<4x32xf32>
    %40 = tpu.matmul %3, %39, %cst_25 {dimension_numbers = #tpu.dot_dimension_numbers<[1], [0], [0], [1], [0, 0, 1, 1], [], []>} : vector<4x32xf32>, vector<32x32xf32>, vector<4x32xf32> -> vector<4x32xf32>
    %41 = arith.addf %36, %40 : vector<4x32xf32>
    %cst_26 = arith.constant 1.000000e+00 : f32
    %42 = vector.broadcast %cst_26 : f32 to vector<32x1xf32>
    %43 = vector.broadcast %42 : vector<32x1xf32> to vector<32x32xf32>
    %44 = arith.mulf %43, %35 : vector<32x32xf32>
    %cst_27 = arith.constant dense<0.000000e+00> : vector<4x32xf32>
    %45 = tpu.matmul %3, %44, %cst_27 {dimension_numbers = #tpu.dot_dimension_numbers<[1], [0], [0], [1], [0, 0, 1, 1], [], []>} : vector<4x32xf32>, vector<32x32xf32>, vector<4x32xf32> -> vector<4x32xf32>
    %46 = arith.addf %41, %45 : vector<4x32xf32>
    %cst_28 = arith.constant 5.000000e-01 : f32
    %47 = vector.broadcast %cst_28 : f32 to vector<4x32xf32>
    %48 = arith.mulf %46, %47 : vector<4x32xf32>
    %c0_29 = arith.constant 0 : index
    %c0_30 = arith.constant 0 : index
    %49 = vector.load %arg18[%c0_29, %c0_30] : memref<32x32xf32, #tpu.memory_space<vmem>>, vector<32x32xf32>
    %cst_31 = arith.constant dense<0.000000e+00> : vector<4x32xf32>
    %50 = tpu.matmul %48, %49, %cst_31 {dimension_numbers = #tpu.dot_dimension_numbers<[1], [0], [0], [1], [0, 0, 1, 1], [], []>} : vector<4x32xf32>, vector<32x32xf32>, vector<4x32xf32> -> vector<4x32xf32>
    %c0_32 = arith.constant 0 : index
    %c0_33 = arith.constant 0 : index
    %51 = vector.load %arg19[%c0_32, %c0_33] : memref<1x32xf32, #tpu.memory_space<vmem>>, vector<1x32xf32>
    %52 = vector.broadcast %51 : vector<1x32xf32> to vector<4x32xf32>
    %53 = arith.addf %50, %52 : vector<4x32xf32>
    %cst_34 = arith.constant 0.000000e+00 : f32
    %54 = vector.broadcast %cst_34 : f32 to vector<4x32xf32>
    %55 = arith.cmpf ogt, %53, %54 : vector<4x32xf32>
    %56 = math.exp %53 : vector<4x32xf32>
    %cst_35 = arith.constant 1.000000e+00 : f32
    %57 = vector.broadcast %cst_35 : f32 to vector<4x32xf32>
    %58 = arith.subf %56, %57 : vector<4x32xf32>
    %cst_36 = arith.constant 1.67326319 : f32
    %59 = vector.broadcast %cst_36 : f32 to vector<4x32xf32>
    %60 = arith.mulf %59, %58 : vector<4x32xf32>
    %61 = arith.select %55, %53, %60 : vector<4x32xi1>, vector<4x32xf32>
    %cst_37 = arith.constant 1.05070102 : f32
    %62 = vector.broadcast %cst_37 : f32 to vector<4x32xf32>
    %63 = arith.mulf %62, %61 : vector<4x32xf32>
    %c0_38 = arith.constant 0 : index
    %c0_39 = arith.constant 0 : index
    %64 = vector.load %arg20[%c0_38, %c0_39] : memref<32x32xf32, #tpu.memory_space<vmem>>, vector<32x32xf32>
    %cst_40 = arith.constant dense<0.000000e+00> : vector<4x32xf32>
    %65 = tpu.matmul %63, %64, %cst_40 {dimension_numbers = #tpu.dot_dimension_numbers<[1], [0], [0], [1], [0, 0, 1, 1], [], []>} : vector<4x32xf32>, vector<32x32xf32>, vector<4x32xf32> -> vector<4x32xf32>
    %c0_41 = arith.constant 0 : index
    %c0_42 = arith.constant 0 : index
    %66 = vector.load %arg21[%c0_41, %c0_42] : memref<1x32xf32, #tpu.memory_space<vmem>>, vector<1x32xf32>
    %67 = vector.broadcast %66 : vector<1x32xf32> to vector<4x32xf32>
    %68 = arith.addf %65, %67 : vector<4x32xf32>
    %c0_43 = arith.constant 0 : index
    %c0_44 = arith.constant 0 : index
    %69 = vector.load %arg22[%c0_43, %c0_44] : memref<32x32xf32, #tpu.memory_space<vmem>>, vector<32x32xf32>
    %cst_45 = arith.constant dense<0.000000e+00> : vector<4x32xf32>
    %70 = tpu.matmul %2, %69, %cst_45 {dimension_numbers = #tpu.dot_dimension_numbers<[1], [0], [0], [1], [0, 0, 1, 1], [], []>} : vector<4x32xf32>, vector<32x32xf32>, vector<4x32xf32> -> vector<4x32xf32>
    %c0_46 = arith.constant 0 : index
    %c0_47 = arith.constant 0 : index
    %71 = vector.load %arg23[%c0_46, %c0_47] : memref<32x32xf32, #tpu.memory_space<vmem>>, vector<32x32xf32>
    %cst_48 = arith.constant dense<0.000000e+00> : vector<4x32xf32>
    %72 = tpu.matmul %68, %71, %cst_48 {dimension_numbers = #tpu.dot_dimension_numbers<[1], [0], [0], [1], [0, 0, 1, 1], [], []>} : vector<4x32xf32>, vector<32x32xf32>, vector<4x32xf32> -> vector<4x32xf32>
    %73 = arith.addf %70, %72 : vector<4x32xf32>
    %74 = arith.mulf %2, %68 : vector<4x32xf32>
    %c0_49 = arith.constant 0 : index
    %c0_50 = arith.constant 0 : index
    %75 = vector.load %arg24[%c0_49, %c0_50] : memref<32x32xf32, #tpu.memory_space<vmem>>, vector<32x32xf32>
    %cst_51 = arith.constant dense<0.000000e+00> : vector<4x32xf32>
    %76 = tpu.matmul %74, %75, %cst_51 {dimension_numbers = #tpu.dot_dimension_numbers<[1], [0], [0], [1], [0, 0, 1, 1], [], []>} : vector<4x32xf32>, vector<32x32xf32>, vector<4x32xf32> -> vector<4x32xf32>
    %77 = arith.addf %73, %76 : vector<4x32xf32>
    %c0_52 = arith.constant 0 : index
    %c0_53 = arith.constant 0 : index
    %78 = vector.load %arg25[%c0_52, %c0_53] : memref<1x32xf32, #tpu.memory_space<vmem>>, vector<1x32xf32>
    %79 = vector.broadcast %78 : vector<1x32xf32> to vector<4x32xf32>
    %80 = arith.addf %77, %79 : vector<4x32xf32>
    %cst_54 = arith.constant 0.000000e+00 : f32
    %81 = vector.broadcast %cst_54 : f32 to vector<4x32xf32>
    %82 = arith.subf %81, %80 : vector<4x32xf32>
    %83 = math.exp %82 : vector<4x32xf32>
    %cst_55 = arith.constant 1.000000e+00 : f32
    %84 = vector.broadcast %cst_55 : f32 to vector<4x32xf32>
    %85 = arith.addf %84, %83 : vector<4x32xf32>
    %cst_56 = arith.constant 1.000000e+00 : f32
    %86 = vector.broadcast %cst_56 : f32 to vector<4x32xf32>
    %87 = arith.divf %86, %85 : vector<4x32xf32>
    %88 = arith.mulf %87, %2 : vector<4x32xf32>
    %cst_57 = arith.constant 1.000000e+00 : f32
    %89 = vector.broadcast %cst_57 : f32 to vector<4x32xf32>
    %90 = arith.subf %89, %87 : vector<4x32xf32>
    %91 = arith.mulf %90, %68 : vector<4x32xf32>
    %92 = arith.addf %88, %91 : vector<4x32xf32>
    %c0_58 = arith.constant 0 : index
    %c0_59 = arith.constant 0 : index
    %93 = vector.load %arg26[%c0_58, %c0_59] : memref<4x32xf32, #tpu.memory_space<vmem>>, vector<4x32xf32>
    tpu.vector_store %arg26[%c0_58, %c0_59], %92 {strides = array<i32>} : memref<4x32xf32, #tpu.memory_space<vmem>>, vector<4x32xf32>,
    return
  }
}

</mosaic_0001>

<bundles_post_ra>
// kernel: ui_aggregator_forward.1
= control target key start
LH: loop header
LB: loop body
LE: loop exit
PB: predicated region body
PF: predicated region fallthrough
CT: control target
= control target key end

     0   :  { %s1777_s0 = inlined_call_operand.vmem [shape: f32[32,32], index: 0, kind: input, shape index: {}]   ;;  %s1778_s1 = inlined_call_operand.vmem [shape: f32[32,32], index: 1, kind: input, shape index: {}]   ;;  %s1779_s2 = inlined_call_operand.vmem [shape: f32[4,32], index: 2, kind: input, shape index: {}]   ;;  %s1780_s3 = inlined_call_operand.vmem [shape: f32[4,32], index: 3, kind: input, shape index: {}]   ;;  %s1781_s4 = inlined_call_operand.vmem [shape: f32[32,4], index: 4, kind: input, shape index: {}]   ;;  %s1782_s5 = inlined_call_operand.vmem [shape: f32[32,32], index: 5, kind: input, shape index: {}]   ;;  %s1783_s6 = inlined_call_operand.vmem [shape: f32[32,32], index: 6, kind: input, shape index: {}]   ;;  %s1784_s7 = inlined_call_operand.vmem [shape: f32[32,32], index: 7, kind: input, shape index: {}]   ;;  %s1785_s8 = inlined_call_operand.vmem [shape: f32[1,32], index: 8, kind: input, shape index: {}]   ;;  %s1786_s9 = inlined_call_operand.vmem [shape: f32[2,32,32], index: 9, kind: input, shape index: {}]   ;;  %s1787_s10 = inlined_call_operand.vmem [shape: f32[2,32,32], index: 10, kind: input, shape index: {}]   ;;  %s1788_s11 = inlined_call_operand.vmem [shape: f32[2,1,32], index: 11, kind: input, shape index: {}]   ;;  %s1789_s12 = inlined_call_operand.vmem [shape: f32[2,32,8], index: 12, kind: input, shape index: {}]   ;;  %s1790_s13 = inlined_call_operand.vmem [shape: f32[2,1,8], index: 13, kind: input, shape index: {}]   ;;  %s1791_s14 = inlined_call_operand.vmem [shape: f32[2,8,1], index: 14, kind: input, shape index: {}]   ;;  %s1792_s15 = inlined_call_operand.vmem [shape: f32[2,1,1], index: 15, kind: input, shape index: {}]   ;;  %s1793_s16 = inlined_call_operand.vmem [shape: f32[2,32,1], index: 16, kind: input, shape index: {}]   ;;  %s1794_s17 = inlined_call_operand.vmem [shape: f32[2,1,1], index: 17, kind: input, shape index: {}]   ;;  %s1795_s18 = inlined_call_operand.vmem [shape: f32[32,32], index: 18, kind: input, shape index: {}]   ;;  %s1796_s19 = inlined_call_operand.vmem [shape: f32[1,32], index: 19, kind: input, shape index: {}]   ;;  %s1797_s20 = inlined_call_operand.vmem [shape: f32[32,32], index: 20, kind: input, shape index: {}]   ;;  %s1798_s21 = inlined_call_operand.vmem [shape: f32[1,32], index: 21, kind: input, shape index: {}]   ;;  %s1799_s22 = inlined_call_operand.vmem [shape: f32[32,32], index: 22, kind: input, shape index: {}]   ;;  %s1800_s23 = inlined_call_operand.vmem [shape: f32[32,32], index: 23, kind: input, shape index: {}]   ;;  %s1801_s24 = inlined_call_operand.vmem [shape: f32[32,32], index: 24, kind: input, shape index: {}]   ;;  %s1802_s25 = inlined_call_operand.vmem [shape: f32[1,32], index: 25, kind: input, shape index: {}]   ;;  %s1803_s26 = inlined_call_operand.hbm [shape: f32[4,32], index: 26, kind: output, shape index: {}]  }
   0x1   :  { %1809 = sst [smem:[#allocation5_spill]] %s1777_s0 }
   0x2   :  { %1810 = sst [smem:[#allocation6_spill]] %s1778_s1 }
   0x3   :  { %1811 = sst [smem:[#allocation7_spill]] %s1779_s2 }
   0x4   :  { %1812 = sst [smem:[#allocation8_spill]] %s1780_s3 }
   0x5   :  { %1813 = sst [smem:[#allocation9_spill]] %s1782_s5 }
   0x6   :  { %1814 = sst [smem:[#allocation10_spill]] %s1783_s6 }
   0x7   :  { %1815 = sst [smem:[#allocation11_spill]] %s1784_s7 }
   0x8   :  { %1816 = sst [smem:[#allocation12_spill]] %s1785_s8 }
   0x9   :  { %s1817_s2 = sld [smem:[#allocation10_spill]]  ;;  %vm102_vm0 = vcmask 261120   ;;  %s1818_s8 = sld [smem:[#allocation6_spill]] }
   0xa   :  { %s1819_s27 = sld [smem:[#allocation9_spill]] }
   0xf   :  { %v98_v0 = vld [vmem:[%s1817_s2] sm:$0xff]  ;;  %v99_v1 = vld [vmem:[%s1817_s2 + $0x8] sm:$0xff]  ;;  %v100_v2 = vld [vmem:[%s1817_s2 + $0x10] sm:$0xff] }
  0x10   :  { %v1273_v3 = vpack.c.bf16 %v99_v1, %v98_v0  ;;  %v101_v4 = vld [vmem:[%s1817_s2 + $0x18] sm:$0xff]  ;;  %v1561_v5 = vld [vmem:[%s1818_s8] sm:$0xff]  ;;  %v95_v8 = vld [vmem:[%s1819_s27 + $0x8] sm:$0xff] }
  0x11   :  { %v1277_v6 = vpack.c.bf16 %v101_v4, %v100_v2  ;;  %1162 = vmatprep.mubr.msk.f32.mxu0 %vm102_vm0, %v1561_v5  ;;  %v94_v7 = vld [vmem:[%s1819_s27] sm:$0xff]  ;;  %v96_v10 = vld [vmem:[%s1819_s27 + $0x10] sm:$0xff]  ;;  %v97_v11 = vld [vmem:[%s1819_s27 + $0x18] sm:$0xff] }
  0x12   :  { %1274 = vmatprep.subr.bf16.mxu0 %v1273_v3  ;;  %v1281_v9 = vpack.c.bf16 %v95_v8, %v94_v7 }
  0x13   :  { %1276 = vmatpush3.bf16.msra.mxu0 %v1273_v3 }
  0x14   :  { %1278 = vmatprep.subr.bf16.mxu0 %v1277_v6 }
  0x15   :  { %31 = vsyncpa [#allocation3], 0  ;;  %v1580_v12 = vld [vmem:[%s1818_s8 + $0x8] sm:$0xff]  ;;  %v1585_v13 = vld [vmem:[%s1818_s8 + $0x10] sm:$0xff]  ;;  %v1285_v14 = vpack.c.bf16 %v97_v11, %v96_v10  ;;  %s1820_s6 = sld [smem:[#allocation11_spill]]  ;;  %s1821_s15 = sld [smem:[#allocation5_spill]] }
  0x16   :  { %v1600_v17 = vld [vmem:[%s1818_s8 + $0x18] sm:$0xff]  ;;  %s1822_s5 = sld [smem:[#allocation12_spill]]  ;;  %vm1408_vm1 = vmmov 0   ;;  %s1823_s11 = sld [smem:[#allocation8_spill]]  ;;  %vm1055_vm3 = vcmask 257024  }
  0x17   :  { %1280 = vmatpush3.bf16.msra.mxu0 %v1277_v6  ;;  %s1824_s8 = sld [smem:[#allocation7_spill]]  ;;  %s1410_s10 = smov [#allocation2]  }
  0x18   :  { %1282 = vmatprep.subr.bf16.mxu0 %v1281_v9 }
  0x1a   :  { %1163 = vmatmul.mubr.msk.f32.vlgmr.msra.gmra.mrb[0].mxu0 %vm102_vm0, %v1580_v12 }
  0x1b   :  { %v301_v15 = vld [vmem:[%s1820_s6] sm:$0xff]  ;;  %v302_v16 = vld [vmem:[%s1820_s6 + $0x8] sm:$0xff]  ;;  %1284 = vmatpush3.bf16.msra.mxu0 %v1281_v9  ;;  %1165 = vmatprep.mubr.msk.f32.mxu0 %vm102_vm0, %v1585_v13  ;;  %v303_v20 = vld [vmem:[%s1820_s6 + $0x10] sm:$0xff] }
  0x1c   :  { %1286 = vmatprep.subr.bf16.mxu0 %v1285_v14  ;;  %v1605_v18 = vld [vmem:[%s1821_s15] sm:$0xff]  ;;  %v1289_v19 = vpack.c.bf16 %v302_v16, %v301_v15  ;;  %v304_v21 = vld [vmem:[%s1820_s6 + $0x18] sm:$0xff]  ;;  %v85_v22 = vld [vmem:[%s1821_s15 + $0x8] sm:$0xff]  ;;  %s1063_s6 = sshll.u32 %s1410_s10, 4  ;;  %s1064_s6 = int_to_ptr.vmem [resolvable:$true] %s1063_s6 }
  0x1d   :  { %v1623_v23 = vld [vmem:[%s1821_s15 + $0x10] sm:$0xff]  ;;  %v1293_v24 = vpack.c.bf16 %v304_v21, %v303_v20  ;;  %v297_v25 = vmul.f32 %v1561_v5, %v1605_v18  ;;  %v87_v26 = vld [vmem:[%s1821_s15 + $0x18] sm:$0xff]  ;;  %v298_v27 = vmul.f32 %v1580_v12, %v85_v22  ;;  %v1083_v30 = vld [vmem:[%s1822_s5] ss:$0 sm:$0xff]  ;;  %v1407_v20 = vmov 0.0|0.0   ;;  %p1388_p1 = scmp.lt.s32.totalorder %s1064_s6, %s1064_s6 }
  0x1e   :  { %1166 = vmatmul.mubr.msk.f32.gmra.mrb[2].mxu0 %vm102_vm0, %v1600_v17  ;;  %v299_v28 = vmul.f32 %v1585_v13, %v1623_v23  ;;  %v300_v29 = vmul.f32 %v1600_v17, %v87_v26  ;;  %1297 = vmatprep.subr.bf16.mxu1 %v1407_v20 }
  0x1f   :  { %1288 = vmatpush3.bf16.msra.mxu0 %v1285_v14  ;;  %1176 = vmatprep.mubr.msk.f32.mxu0 %vm102_vm0, %v1605_v18 }
  0x20   :  { %1290 = vmatprep.subr.bf16.mxu0 %v1289_v19 }
  0x22   :  { %1177 = vmatmul.mubr.msk.f32.vlgmr.msra.gmra.mrb[0].mxu0 %vm102_vm0, %v85_v22 }
  0x23   :  { %1292 = vmatpush3.bf16.msra.mxu0 %v1289_v19  ;;  %1179 = vmatprep.mubr.msk.f32.mxu0 %vm102_vm0, %v1623_v23 }
  0x24   :  { %1294 = vmatprep.subr.bf16.mxu0 %v1293_v24 }
  0x26   :  { %1180 = vmatmul.mubr.msk.f32.gmra.mrb[2].mxu0 %vm102_vm0, %v87_v26 }
  0x27   :  { %1296 = vmatpush3.bf16.msra.mxu0 %v1293_v24  ;;  %1190 = vmatprep.mubr.msk.f32.mxu0 %vm102_vm0, %v297_v25 }
  0x28   :  { %1315 = vmatprep.subr.bf16.mxu0 %v1407_v20 }
  0x2a   :  { %1191 = vmatmul.mubr.msk.f32.vlgmr.msra.gmra.mrb[0].mxu0 %vm102_vm0, %v298_v27 }
  0x2b   :  { %1193 = vmatprep.mubr.msk.f32.mxu0 %vm102_vm0, %v299_v28 }
  0x2e   :  { %1194 = vmatmul.mubr.msk.f32.gmra.mrb[2].mxu0 %vm102_vm0, %v300_v29 }
  0xfd   :  { %v1192_v31 = vpop.f32.mrb[0].mxu0 }
  0xfe   :  { %v414_v32 = vadd.f32 %v1192_v31, %v1083_v30  ;;  %v383_v33 = vpop.f32.mrb[1].mxu0 }
  0xff   :  { %v413_v34 = vadd.f32 %v1083_v30, %v383_v33 }
 0x100   :  { %v418_v35 = vsub.f32 0.0, %v414_v32 }
 0x101   :  { %v417_v36 = vsub.f32 0.0, %v413_v34  ;;  %v1195_v37 = vpop.f32.mrb[2].mxu0 }
 0x102   :  { %v423_v38 = vmul.f32 1.442695, %v418_v35  ;;  %v416_v39 = vadd.f32 %v1195_v37, %v1083_v30  ;;  %v393_v40 = vpop.f32.mrb[3].mxu0 }
 0x103   :  { %v421_v41 = vmul.f32 1.442695, %v417_v36  ;;  %v415_v42 = vadd.f32 %v1083_v30, %v393_v40  ;;  %v629_v40 = vld [vmem:[%s1795_s18] sm:$0xff] }
 0x104   :  { %1353 = vpow2.f32 %v423_v38  ;;  %v420_v43 = vsub.f32 0.0, %v416_v39  ;;  %v93_v39 = vld [vmem:[%s1823_s11] sm:$0xf] }
 0x105   :  { %1355 = vpow2.f32 %v421_v41  ;;  %v419_v44 = vsub.f32 0.0, %v415_v42  ;;  %v630_v41 = vld [vmem:[%s1795_s18 + $0x8] sm:$0xff] }
 0x106   :  { %v427_v45 = vmul.f32 1.442695, %v420_v43  ;;  %v1310_v42 = vpack.c.bf16 %v630_v41, %v629_v40  ;;  %v631_v43 = vld [vmem:[%s1795_s18 + $0x10] sm:$0xff] }
 0x107   :  { %v425_v46 = vmul.f32 1.442695, %v419_v44  ;;  %v632_v44 = vld [vmem:[%s1795_s18 + $0x18] sm:$0xff] }
 0x108   :  { %1357 = vpow2.f32 %v427_v45  ;;  %v1313_v45 = vpack.c.bf16 %v632_v44, %v631_v43 }
 0x109   :  { %1359 = vpow2.f32 %v425_v46 }
 0x10e   :  { %v1354_v47 = vpop.eup %1353 }
 0x10f   :  { %v1356_v48 = vpop.eup %1355  ;;  %v430_v49 = vadd.f32 1.0, %v1354_v47 }
 0x110   :  { %v429_v50 = vadd.f32 1.0, %v1356_v48 }
 0x111   :  { %1361 = vrcp.f32 %v430_v49  ;;  %v720_v49 = vld [vmem:[%s1797_s20] sm:$0xff] }
 0x112   :  { %v1358_v51 = vpop.eup %1357  ;;  %1363 = vrcp.f32 %v429_v50  ;;  %v721_v50 = vld [vmem:[%s1797_s20 + $0x8] sm:$0xff] }
 0x113   :  { %v1360_v52 = vpop.eup %1359  ;;  %v432_v53 = vadd.f32 1.0, %v1358_v51  ;;  %v1316_v51 = vpack.c.bf16 %v721_v50, %v720_v49 }
 0x114   :  { %v431_v54 = vadd.f32 1.0, %v1360_v52  ;;  %v722_v52 = vld [vmem:[%s1797_s20 + $0x10] sm:$0xff] }
 0x115   :  { %1365 = vrcp.f32 %v432_v53  ;;  %1317 = vmatpush3.bf16.msra.mxu0 %v1316_v51  ;;  %v723_v53 = vld [vmem:[%s1797_s20 + $0x18] sm:$0xff] }
 0x116   :  { %1367 = vrcp.f32 %v431_v54  ;;  %1318 = vmatprep.subr.bf16.mxu0 %v1407_v20  ;;  %v1319_v54 = vpack.c.bf16 %v723_v53, %v722_v52 }
 0x119   :  { %1320 = vmatpush3.bf16.msra.mxu0 %v1319_v54 }
 0x11a   :  { %1327 = vmatprep.subr.bf16.mxu0 %v1407_v20 }
 0x11b   :  { %v1362_v55 = vpop.eup %1361 }
 0x11c   :  { %v1364_v56 = vpop.eup %1363  ;;  %v446_v57 = vsub.f32 1.0, %v1362_v55  ;;  %v442_v63 = vmul.f32 %v1362_v55, %v85_v22  ;;  %v808_v55 = vld [vmem:[%s1800_s23] sm:$0xff] }
 0x11d   :  { %v445_v58 = vsub.f32 1.0, %v1364_v56  ;;  %v441_v61 = vmul.f32 %v1364_v56, %v1605_v18  ;;  %v809_v56 = vld [vmem:[%s1800_s23 + $0x8] sm:$0xff] }
 0x11e   :  { %v450_v59 = vmul.f32 %v446_v57, %v1580_v12  ;;  %v1322_v57 = vpack.c.bf16 %v809_v56, %v808_v55 }
 0x11f   :  { %v1366_v60 = vpop.eup %1365  ;;  %v449_v62 = vmul.f32 %v445_v58, %v1561_v5  ;;  %v810_v58 = vld [vmem:[%s1800_s23 + $0x10] sm:$0xff] }
 0x120   :  { %v1368_v0 = vpop.eup %1367  ;;  %v448_v1 = vsub.f32 1.0, %v1366_v60  ;;  %v454_v3 = vadd.f32 %v450_v59, %v442_v63  ;;  %v444_v10 = vmul.f32 %v1366_v60, %v87_v26  ;;  %v811_v59 = vld [vmem:[%s1800_s23 + $0x18] sm:$0xff] }
 0x121   :  { %v453_v2 = vadd.f32 %v449_v62, %v441_v61  ;;  %v447_v4 = vsub.f32 1.0, %v1368_v0  ;;  %v443_v8 = vmul.f32 %v1368_v0, %v1623_v23  ;;  %v1325_v60 = vpack.c.bf16 %v811_v59, %v810_v58  ;;  %v1086_v61 = vld [vmem:[%s1796_s19] ss:$0 sm:$0xff] }
 0x122   :  { %v452_v6 = vmul.f32 %v448_v1, %v1600_v17  ;;  %v458_v12 = vmul.f32 %v454_v3, %v454_v3 }
 0x123   :  { %v457_v7 = vmul.f32 %v453_v2, %v453_v2  ;;  %v451_v9 = vmul.f32 %v447_v4, %v1585_v13  ;;  %v1409_v13 = vmov 0.0   ;;  %v804_v4 = vld [vmem:[%s1799_s22] sm:$0xff] }
 0x124   :  { %v456_v15 = vadd.f32 %v452_v6, %v444_v10  ;;  %v464_v16 = vsel %vm102_vm0, %v458_v12, 0.0  ;;  %1204 = vmatprep.mubr.msk.f32.mxu1 %vm1408_vm1, %v1409_v13  ;;  %1237 = vmatprep.mubr.msk.f32.mxu0 %vm1408_vm1, %v1409_v13  ;;  %v805_v6 = vld [vmem:[%s1799_s22 + $0x8] sm:$0xff]  ;;  %v807_v12 = vld [vmem:[%s1799_s22 + $0x18] sm:$0xff] }
 0x125   :  { %v461_v11 = vsel %vm102_vm0, %v457_v7, 0.0  ;;  %v455_v14 = vadd.f32 %v451_v9, %v443_v8  ;;  %v1328_v9 = vpack.c.bf16 %v805_v6, %v804_v4 }
 0x126   :  { %462 = vadd.xlane.f32.xlu0 %v461_v11  ;;  %v460_v19 = vmul.f32 %v456_v15, %v456_v15  ;;  %v806_v11 = vld [vmem:[%s1799_s22 + $0x10] sm:$0xff] }
 0x127   :  { %v459_v5 = vmul.f32 %v455_v14, %v455_v14 }
 0x128   :  { %v470_v17 = vsel %vm102_vm0, %v460_v19, 0.0 }
 0x129   :  { %v467_v18 = vsel %vm102_vm0, %v459_v5, 0.0  ;;  %v959_v5 = vld [vmem:[%s1801_s24] sm:$0xff] }
 0x12a   :  { %465 = vadd.xlane.f32.xlu0 %v464_v16  ;;  %468 = vadd.xlane.f32.xlu1 %v467_v18  ;;  %v960_v16 = vld [vmem:[%s1801_s24 + $0x8] sm:$0xff]  ;;  %v1089_v18 = vld [vmem:[%s1798_s21] ss:$0 sm:$0xff] }
 0x12e   :  { %471 = vadd.xlane.f32.xlu1 %v470_v17  ;;  %v1334_v17 = vpack.c.bf16 %v960_v16, %v959_v5 }
 0x1b3   :  { %v463_v21 = vpop.xlane.xlu0 %462 }
 0x1b4   :  { %v473_v22 = vmax.f32 %v463_v21, 1e-24 }
 0x1b6   :  { %1369 = vrsqrt.f32 %v473_v22 }
 0x1b7   :  { %v466_v23 = vpop.xlane.xlu0 %465  ;;  %v469_v24 = vpop.xlane.xlu1 %468 }
 0x1b8   :  { %v474_v25 = vmax.f32 %v466_v23, 1e-24  ;;  %v475_v26 = vmax.f32 %v469_v24, 1e-24  ;;  %v961_v23 = vld [vmem:[%s1801_s24 + $0x10] sm:$0xff]  ;;  %v962_v24 = vld [vmem:[%s1801_s24 + $0x18] sm:$0xff] }
 0x1ba   :  { %1371 = vrsqrt.f32 %v474_v25  ;;  %v1337_v25 = vpack.c.bf16 %v962_v24, %v961_v23 }
 0x1bb   :  { %v472_v27 = vpop.xlane.xlu1 %471  ;;  %1373 = vrsqrt.f32 %v475_v26 }
 0x1bc   :  { %v476_v28 = vmax.f32 %v472_v27, 1e-24 }
 0x1be   :  { %1375 = vrsqrt.f32 %v476_v28 }
 0x1c0   :  { %v1370_v29 = vpop.eup %1369 }
 0x1c1   :  { %v481_v31 = vmul.f32 %v1370_v29, %v453_v2 }
 0x1c4   :  { %v1372_v30 = vpop.eup %1371 }
 0x1c5   :  { %v482_v32 = vmul.f32 %v1372_v30, %v454_v3  ;;  %v1374_v33 = vpop.eup %1373 }
 0x1c6   :  { %v483_v36 = vmul.f32 %v1374_v33, %v455_v14  ;;  %v1331_v14 = vpack.c.bf16 %v807_v12, %v806_v11  ;;  %v1094_v33 = vld [vmem:[%s1802_s25] ss:$0 sm:$0xff]  ;;  %s1383_s25 = scalar_lea.vmem %s1064_s6, 64 }
 0x1c7   :  { %v1298_v34 = vpack.c.bf16 %v482_v32, %v481_v31  ;;  %p1384_p0 = scmp.ne.s32.totalorder %s1064_s6, %s1383_s25  ;;  %p1389_p2 = scmp.lt.s32.totalorder %s1383_s25, %s1383_s25 }
 0x1c8   :  { %v1376_v35 = vpop.eup %1375 }
 0x1c9   :  { %1299 = vmatpush3.bf16.msra.mxu1 %v1298_v34  ;;  %v484_v37 = vmul.f32 %v1376_v35, %v456_v15  ;;  %v92_v15 = vld [vmem:[%s1824_s8] sm:$0xf]  ;;  %p1390_p3 = por %p1389_p2, %p1388_p1 }
 0x1ca   :  { %1300 = vmatprep.subr.bf16.mxu1 %v1407_v20 }
 0x1cb   :  { %v1301_v38 = vpack.c.bf16 %v484_v37, %v483_v36  ;;  %p1391_p4 = pnand %p1390_p3, %p1384_p0 }
 0x1cd   :  { %1302 = vmatpush3.bf16.msra.mxu1 %v1301_v38 }
 0x1ce   :  { %1303 = vmatprep.subr.bf16.mxu1 %v1407_v20 }
 0x1d0   :  { %1205 = vmatmul.mubr.msk.f32.vlgmr.msra.gmra.mrb[0].mxu1 %vm102_vm0, %v93_v39 }
 0x1d1   :  { %1305 = vmatpush3.bf16.msra.mxu1 %v1298_v34  ;;  %1215 = vmatprep.mubr.msk.f32.mxu1 %vm1408_vm1, %v1409_v13 }
 0x1d2   :  { %1306 = vmatprep.subr.bf16.mxu1 %v1407_v20 }
 0x1d5   :  { %1308 = vmatpush3.bf16.msra.mxu1 %v1301_v38 }
 0x1d6   :  { %1309 = vmatprep.subr.bf16.mxu1 %v1407_v20 }
 0x1d8   :  { %1216 = vmatmul.mubr.msk.f32.vlgmr.msra.gmra.mrb[0].mxu1 %vm102_vm0, %v93_v39 }
 0x1d9   :  { %1311 = vmatpush3.bf16.msra.mxu1 %v1310_v42  ;;  %1226 = vmatprep.mubr.msk.f32.mxu1 %vm1408_vm1, %v1409_v13 }
 0x1da   :  { %1312 = vmatprep.subr.bf16.mxu1 %v1407_v20 }
 0x1dd   :  { %1314 = vmatpush3.bf16.msra.mxu1 %v1313_v45 }
 0x1de   :  { %1321 = vmatprep.subr.bf16.mxu1 %v1407_v20 }
 0x2ab   :  { %v624_v46 = vpop.f32.mrb[0].mxu1 }
 0x2ac   :  { %v628_v47 = vmul.f32 0.5, %v624_v46  ;;  %v1217_v48 = vpop.f32.mrb[1].mxu1 }
 0x2ae   :  { %1227 = vmatmul.mubr.msk.f32.vlgmr.msra.gmra.mrb[2].mxu1 %vm102_vm0, %v628_v47 }
 0x2af   :  { %1248 = vmatprep.mubr.msk.f32.mxu1 %vm1408_vm1, %v1409_v13  ;;  %1323 = vmatpush3.bf16.msra.mxu1 %v1322_v57 }
 0x2b0   :  { %1324 = vmatprep.subr.bf16.mxu1 %v1407_v20 }
 0x2b3   :  { %1326 = vmatpush3.bf16.msra.mxu1 %v1325_v60 }
 0x2b4   :  { %1333 = vmatprep.subr.bf16.mxu1 %v1407_v20 }
 0x381   :  { %v709_v62 = vpop.f32.mrb[2].mxu1 }
 0x382   :  { %v710_v63 = vadd.f32 %v1086_v61, %v709_v62  ;;  %v1228_v0 = vpop.f32.mrb[3].mxu1 }
 0x384   :  { %v714_v1 = vmul.f32 1.442695, %v710_v63  ;;  %vm713_vm2 = vcmp.gt.f32.partialorder %v710_v63, 0.0 }
 0x386   :  { %1377 = vpow2.f32 %v714_v1 }
 0x390   :  { %v1378_v2 = vpop.eup %1377 }
 0x391   :  { %v1088_v3 = vadd.f32 -1.0, %v1378_v2 }
 0x393   :  { %v717_v7 = vmul.f32 1.6732632, %v1088_v3 }
 0x395   :  { %v718_v8 = vsel %vm713_vm2, %v710_v63, %v717_v7 }
 0x396   :  { %v719_v10 = vmul.f32 1.050701, %v718_v8 }
 0x398   :  { %1238 = vmatmul.mubr.msk.f32.vlgmr.msra.gmra.mrb[4].mxu0 %vm102_vm0, %v719_v10 }
 0x399   :  { %1329 = vmatpush3.bf16.msra.mxu0 %v1328_v9  ;;  %1259 = vmatprep.mubr.msk.f32.mxu0 %vm1408_vm1, %v1409_v13 }
 0x39a   :  { %1330 = vmatprep.subr.bf16.mxu0 %v1407_v20 }
 0x39d   :  { %1332 = vmatpush3.bf16.msra.mxu0 %v1331_v14 }
 0x3a0   :  { %1260 = vmatmul.mubr.msk.f32.vlgmr.msra.gmra.mrb[6].mxu0 %vm102_vm0, %v92_v15 }
 0x46b   :  { %v800_v19 = vpop.f32.mrb[4].mxu0 }
 0x46c   :  { %v801_v21 = vadd.f32 %v1089_v18, %v800_v19  ;;  %v1239_v22 = vpop.f32.mrb[5].mxu0 }
 0x46e   :  { %1249 = vmatmul.mubr.msk.f32.vlgmr.msra.gmra.mrb[4].mxu1 %vm102_vm0, %v801_v21  ;;  %v958_v26 = vmul.f32 %v801_v21, %v92_v15 }
 0x46f   :  { %1335 = vmatpush3.bf16.msra.mxu1 %v1334_v17  ;;  %1270 = vmatprep.mubr.msk.f32.mxu1 %vm1408_vm1, %v1409_v13 }
 0x470   :  { %1336 = vmatprep.subr.bf16.mxu1 %v1407_v20 }
 0x473   :  { %1338 = vmatpush3.bf16.msra.mxu1 %v1337_v25  ;;  %v954_v27 = vpop.f32.mrb[6].mxu0 }
 0x474   :  { %v1261_v28 = vpop.f32.mrb[7].mxu0 }
 0x476   :  { %1271 = vmatmul.mubr.msk.f32.vlgmr.msra.gmra.mrb[6].mxu1 %vm102_vm0, %v958_v26 }
 0x541   :  { %v881_v29 = vpop.f32.mrb[4].mxu1 }
 0x542   :  { %v955_v30 = vadd.f32 %v954_v27, %v881_v29  ;;  %v1250_v31 = vpop.f32.mrb[5].mxu1 }
 0x549   :  { %v1032_v32 = vpop.f32.mrb[6].mxu1 }
 0x54a   :  { %v1036_v34 = vadd.f32 %v1032_v32, %v955_v30  ;;  %v1272_v35 = vpop.f32.mrb[7].mxu1 }
 0x54c   :  { %v1044_v36 = vadd.f32 %v1094_v33, %v1036_v34 }
 0x54e   :  { %v1045_v13 = vsub.f32 0.0, %v1044_v36 }
 0x550   :  { %v1046_v37 = vmul.f32 1.442695, %v1045_v13 }
 0x552   :  { %1379 = vpow2.f32 %v1046_v37 }
 0x55c   :  { %v1380_v20 = vpop.eup %1379 }
 0x55d   :  { %v1048_v38 = vadd.f32 1.0, %v1380_v20 }
 0x55f   :  { %1381 = vrcp.f32 %v1048_v38 }
 0x569   :  { %v1382_v39 = vpop.eup %1381 }
 0x56a   :  { %v1052_v40 = vsub.f32 1.0, %v1382_v39  ;;  %v1051_v41 = vmul.f32 %v1382_v39, %v92_v15 }
 0x56c   :  { %v1053_v42 = vmul.f32 %v1052_v40, %v801_v21 }
 0x56e   :  { %v1054_v43 = vadd.f32 %v1053_v42, %v1051_v41 }
 0x570   :  { %1056 = vst.msk [vmem:[#allocation2] sm:$0xf] %vm1055_vm3, %v1054_v43 }
 0x571   :  { %1394 = shalt.err (!%p1391_p4)
}
 0x572   :  { %s1395_s20 = scalar_lea.hbm %s1803_s26, 64 }
 0x573   :  { %p1396_p5 = scmp.ne.s32.totalorder %s1803_s26, %s1395_s20  ;;  %p1399_p6 = scmp.lt.u32.totalorder %s1395_s20, %s1803_s26 }
 0x575   :  { %p1401_p7 = pnand %p1399_p6, %p1396_p5 }
 0x577   :  { %1404 = shalt.err (!%p1401_p7)
}
 0x578   :  { %1066 = dma.vmem_to_hbm [thread:$0]  %s1064_s6, 64, %s1803_s26, [#allocation3]  }
 0x579   :  { %1405 = dma.done.wait [#allocation3], 64  }
 0x57a   :  { %1406 = vsyncadd [#allocation3], 4294967232 }
 0x57b   :  { %1070 = vsyncpa [#allocation3], 1 }

</bundles_post_ra>
